<compile_context>
chip_gen: v7x
topology: tpu7x:2x2x1
jax: 0.10.0
libtpu: 0.0.40
codegen_flags: <defaults>
</compile_context>

<pallas_src>
import jax
import jax.numpy as jnp
from jax.experimental import pallas as pl
from jax.experimental.pallas import tpu as pltpu


OUTPUT_DIM = 128  # self.output_dim in the PyTorch module

# dot_general contracting the LAST dim of BOTH operands: A(M,K) . B(N,K)^T
_DN_LAST = (((1,), (1,)), ((), ()))


def _qa_loss_kernel(q_ref, wq_ref, a_ref, row_ref, diag_ref, colm_ref, cols_ref):
    """Grid = (num_parallel_chunks, tiles_per_chunk).

    q_ref   : (tq, D)  bf16   q_reps row tile (streamed)
    wq_ref  : (D, 128) bf16   pre-transposed Wq (resident)
    a_ref   : (B, 128) bf16   pre-projected answers (resident)
    row_ref : (1,1,1)  f32    sum_r logsumexp_row  (per-chunk accumulator)
    diag_ref: (1,1,1)  f32    sum_r scores[r, r]   (per-chunk accumulator)
    colm_ref: (1,1,B)  f32    running per-column max       (per-chunk)
    cols_ref: (1,1,B)  f32    running per-column sum-of-exp (per-chunk)
    """
    i = pl.program_id(0)           # parallel chunk index
    j = pl.program_id(1)           # q-tile index within the chunk (reduction)
    T = pl.num_programs(1)
    tq = q_ref.shape[0]
    b = a_ref.shape[0]

    @pl.when(j == 0)
    def _init():
        row_ref[...] = jnp.zeros_like(row_ref)
        diag_ref[...] = jnp.zeros_like(diag_ref)
        colm_ref[...] = jnp.full(colm_ref.shape, -jnp.inf, dtype=colm_ref.dtype)
        cols_ref[...] = jnp.zeros_like(cols_ref)

    # Canonical (M,K)x(K,N) projection (weights pre-transposed in the wrapper).
    q_proj = jnp.dot(q_ref[...], wq_ref[...],
                     preferred_element_type=jnp.float32)          # (tq, 128) f32

    # Dominant matmul in bf16 (MXU bf16 peak), f32 accumulation.
    scores = jax.lax.dot_general(
        q_proj.astype(jnp.bfloat16), a_ref[...],
        dimension_numbers=_DN_LAST,
        preferred_element_type=jnp.float32)                       # (tq, B) f32

    # Diagonal entries for this tile via a direct row dot (no (B,B) iota mask).
    row0 = pl.multiple_of((i * T + j) * tq, tq)
    a_diag = a_ref[pl.ds(row0, tq), :].astype(jnp.float32)        # (tq, 128)
    diag = jnp.sum(q_proj * a_diag, axis=-1, keepdims=True)       # (tq, 1)

    # ---- Row-wise loss (question -> answers): exact lane-axis logsumexp ----
    m_row = jnp.max(scores, axis=-1, keepdims=True)               # (tq, 1)
    p = jnp.exp(scores - m_row)      # the ONLY full-tile exp     # (tq, B)
    lse_row = m_row + jnp.log(jnp.sum(p, axis=-1, keepdims=True))  # (tq, 1)

    row_ref[...] += jnp.sum(lse_row, axis=0, keepdims=True).reshape(1, 1, 1)
    diag_ref[...] += jnp.sum(diag, axis=0, keepdims=True).reshape(1, 1, 1)

    # ---- Column-wise loss (answer -> questions): online logsumexp ----
    # Reuse p:  sum_r exp(scores[r,c] - m_tile) = sum_r p[r,c] * exp(m_row[r] - m_tile)
    # (scalar tile max as the stabilization reference; fine for bounded scores).
    m_tile = jnp.max(m_row, axis=0, keepdims=True)                # (1, 1)
    e_row = jnp.exp(m_row - m_tile)                               # (tq, 1), <= 1
    t = jnp.sum(p * e_row, axis=0, keepdims=True)                 # (1, B) sublane reduce

    col_m = colm_ref[...]                                         # (1, 1, B)
    col_s = cols_ref[...]                                         # (1, 1, B)
    m_tile3 = m_tile.reshape(1, 1, 1)
    m_new = jnp.maximum(col_m, m_tile3)                           # (1, 1, B)
    cols_ref[...] = (col_s * jnp.exp(col_m - m_new)
                     + t.reshape(1, 1, b) * jnp.exp(m_tile3 - m_new))
    colm_ref[...] = m_new


def qa_contrastive_loss(q_reps, a_reps, wq, wa, *, row_tile=256, num_parallel=2):
    """q_reps/a_reps: (B, D) f32.  wq/wa: (128, D) f32 (torch Linear layout)."""
    B, D = q_reps.shape
    assert a_reps.shape == (B, D)
    assert wq.shape == (OUTPUT_DIM, D) and wa.shape == (OUTPUT_DIM, D)

    tq = min(row_tile, B)
    assert B % tq == 0, "batch must be divisible by the q row tile"
    n_tiles = B // tq
    nc = num_parallel if (num_parallel > 0 and n_tiles % num_parallel == 0) else 1
    T = n_tiles // nc

    # bf16 kernel operands; all logsumexp math stays f32 inside the kernel.
    q16 = q_reps.astype(jnp.bfloat16)
    wq_t16 = wq.T.astype(jnp.bfloat16)                       # (D, 128) canonical layout
    # Hoisted answer projection: one tiny XLA matmul, bf16 resident input.
    a_proj16 = jnp.dot(a_reps.astype(jnp.bfloat16), wa.astype(jnp.bfloat16).T,
                       preferred_element_type=jnp.float32).astype(jnp.bfloat16)

    part_row, part_diag, part_colm, part_cols = pl.pallas_call(
        _qa_loss_kernel,
        out_shape=(
            jax.ShapeDtypeStruct((nc, 1, 1), jnp.float32),   # sum_r lse_row
            jax.ShapeDtypeStruct((nc, 1, 1), jnp.float32),   # sum_r diag
            jax.ShapeDtypeStruct((nc, 1, B), jnp.float32),   # col running max
            jax.ShapeDtypeStruct((nc, 1, B), jnp.float32),   # col running sum-exp
        ),
        grid=(nc, T),
        in_specs=[
            pl.BlockSpec((tq, D), lambda i, j: (i * T + j, 0)),       # q tile, streamed
            pl.BlockSpec((D, OUTPUT_DIM), lambda i, j: (0, 0)),       # Wq^T, resident
            pl.BlockSpec((B, OUTPUT_DIM), lambda i, j: (0, 0)),       # a_proj, resident
        ],
        out_specs=(
            pl.BlockSpec((1, 1, 1), lambda i, j: (i, 0, 0)),
            pl.BlockSpec((1, 1, 1), lambda i, j: (i, 0, 0)),
            pl.BlockSpec((1, 1, B), lambda i, j: (i, 0, 0)),
            pl.BlockSpec((1, 1, B), lambda i, j: (i, 0, 0)),
        ),
        compiler_params=pltpu.CompilerParams(
            # chunk axis is independent (per-chunk partial outputs) -> parallel
            # (megacore on v7x); q-tile axis carries accumulators -> arbitrary.
            dimension_semantics=("parallel", "arbitrary"),
            vmem_limit_bytes=48 * 1024 * 1024,
        ),
    )(q16, wq_t16, a_proj16)

    # Tiny epilogue in plain JAX: merge the per-chunk partials.
    row_sum = jnp.sum(part_row)
    diag_sum = jnp.sum(part_diag)
    colm = part_colm[:, 0, :]                                # (nc, B)
    cols = part_cols[:, 0, :]                                # (nc, B)
    m = jnp.max(colm, axis=0)                                # (B,)
    s = jnp.sum(cols * jnp.exp(colm - m[None, :]), axis=0)   # (B,)
    col_sum = jnp.sum(m + jnp.log(s))
    loss = ((row_sum - diag_sum) + (col_sum - diag_sum)) / (2.0 * B)
    return loss


def synthetic_sent_encoder(ids, mask, emb_table):
    """Deterministic stand-in for sent_encoder(...)[1] (pooled output)."""
    x = emb_table[ids]                                    # (B, S, D)
    m = mask[..., None].astype(jnp.float32)               # (B, S, 1)
    pooled = (x * m).sum(axis=1) / jnp.maximum(m.sum(axis=1), 1.0)
    return jnp.tanh(pooled)                               # (B, D)


def eli5c_qa_forward(q_ids, q_mask, a_ids, a_mask, emb_table, wq, wa,
                     *, row_tile=256, num_parallel=2):
    q_reps = synthetic_sent_encoder(q_ids, q_mask, emb_table)
    a_reps = synthetic_sent_encoder(a_ids, a_mask, emb_table)
    return qa_contrastive_loss(q_reps, a_reps, wq, wa,
                               row_tile=row_tile, num_parallel=num_parallel)


def _reference_loss(q_reps, a_reps, wq, wa):
    """Pure-JAX reference using the same bf16-quantized operands."""
    q = q_reps.astype(jnp.bfloat16).astype(jnp.float32)
    a = a_reps.astype(jnp.bfloat16).astype(jnp.float32)
    wq32 = wq.astype(jnp.bfloat16).astype(jnp.float32)
    wa32 = wa.astype(jnp.bfloat16).astype(jnp.float32)
    q_proj = q @ wq32.T
    a_proj = a @ wa32.T
    scores = q_proj @ a_proj.T

    def ce(s):
        lse = jax.scipy.special.logsumexp(s, axis=-1)
        return jnp.mean(lse - jnp.diag(s))

    return 0.5 * (ce(scores) + ce(scores.T))


if __name__ == "__main__":
    # Small deterministic shapes; row_tile=8 with num_parallel=2 gives a
    # (2, 2) grid so both the multi-tile online accumulation path and the
    # per-chunk partial merge are actually exercised.
    B = 32        # batch of QA pairs (CE with arange targets implies square scores)
    S = 8         # sequence length
    DIM = 32      # sent_encoder hidden dim
    VOCAB = 64

    key = jax.random.PRNGKey(0)
    k_emb, k_wq, k_wa, k_qids, k_aids = jax.random.split(key, 5)

    emb_table = jax.random.normal(k_emb, (VOCAB, DIM), dtype=jnp.float32) * 0.1
    # torch.nn.Linear(dim, 128, bias=False) weights: shape (128, dim)
    wq = jax.random.normal(k_wq, (OUTPUT_DIM, DIM), dtype=jnp.float32) * 0.05
    wa = jax.random.normal(k_wa, (OUTPUT_DIM, DIM), dtype=jnp.float32) * 0.05

    q_ids = jax.random.randint(k_qids, (B, S), 0, VOCAB, dtype=jnp.int32)
    a_ids = jax.random.randint(k_aids, (B, S), 0, VOCAB, dtype=jnp.int32)
    q_mask = jnp.ones((B, S), dtype=jnp.int32)
    a_mask = jnp.ones((B, S), dtype=jnp.int32)

    loss = eli5c_qa_forward(q_ids, q_mask, a_ids, a_mask, emb_table, wq, wa,
                            row_tile=8, num_parallel=2)
    jax.block_until_ready(loss)

    # Correctness check against a pure-JAX reference (loose tol for bf16/MXU rounding).
    q_reps = synthetic_sent_encoder(q_ids, q_mask, emb_table)
    a_reps = synthetic_sent_encoder(a_ids, a_mask, emb_table)
    ref = _reference_loss(q_reps, a_reps, wq, wa)

    assert loss.shape == () and bool(jnp.isfinite(loss))
    assert abs(float(loss) - float(ref)) < 5e-2, (float(loss), float(ref))
    print("KERNEL_OK")
</pallas_src>

<mosaic_0001>
module attributes {stable_mosaic.version = 11 : i64} {
  func.func @_qa_loss_kernel(%arg0: i32, %arg1: i32, %arg2: memref<8x32xbf16, #tpu.memory_space<vmem>>, %arg3: memref<32x128xbf16, #tpu.memory_space<vmem>>, %arg4: memref<32x128xbf16, #tpu.memory_space<vmem>>, %arg5: memref<1x1x1xf32, #tpu.memory_space<vmem>>, %arg6: memref<1x1x1xf32, #tpu.memory_space<vmem>>, %arg7: memref<1x1x32xf32, #tpu.memory_space<vmem>>, %arg8: memref<1x1x32xf32, #tpu.memory_space<vmem>>) attributes {dimension_semantics = [#tpu.dimension_semantics<parallel>, #tpu.dimension_semantics<arbitrary>], iteration_bounds = array<i64: 2, 2>, scalar_prefetch = 0 : i64, scratch_operands = 0 : i64, tpu.core_type = #tpu.core_type<tc>, window_params = [{transform_indices = @transform_0, window_bounds = array<i64: 8, 32>}, {pipeline_mode = #tpu.pipeline_mode<synchronous>, transform_indices = @transform_1, window_bounds = array<i64: 32, 128>}, {pipeline_mode = #tpu.pipeline_mode<synchronous>, transform_indices = @transform_2, window_bounds = array<i64: 32, 128>}, {transform_indices = @transform_3, window_bounds = array<i64: 1, 1, 1>}, {transform_indices = @transform_4, window_bounds = array<i64: 1, 1, 1>}, {transform_indices = @transform_5, window_bounds = array<i64: 1, 1, 32>}, {transform_indices = @transform_6, window_bounds = array<i64: 1, 1, 32>}]} {
    %c0_i32 = arith.constant 0 : i32
    %0 = arith.cmpi eq, %arg1, %c0_i32 : i32
    %1 = arith.extui %0 : i1 to i32
    %c0_i32_0 = arith.constant 0 : i32
    %2 = arith.cmpi ne, %1, %c0_i32_0 : i32
    scf.if %2 {
      %cst_39 = arith.constant 0.000000e+00 : f32
      %65 = vector.broadcast %cst_39 : f32 to vector<1x1x1xf32>
      %c0_40 = arith.constant 0 : index
      %c0_41 = arith.constant 0 : index
      %c0_42 = arith.constant 0 : index
      %66 = vector.load %arg5[%c0_40, %c0_41, %c0_42] : memref<1x1x1xf32, #tpu.memory_space<vmem>>, vector<1x1x1xf32>
      tpu.vector_store %arg5[%c0_40, %c0_41, %c0_42], %65 {strides = array<i32>} : memref<1x1x1xf32, #tpu.memory_space<vmem>>, vector<1x1x1xf32>,
      %cst_43 = arith.constant 0.000000e+00 : f32
      %67 = vector.broadcast %cst_43 : f32 to vector<1x1x1xf32>
      %c0_44 = arith.constant 0 : index
      %c0_45 = arith.constant 0 : index
      %c0_46 = arith.constant 0 : index
      %68 = vector.load %arg6[%c0_44, %c0_45, %c0_46] : memref<1x1x1xf32, #tpu.memory_space<vmem>>, vector<1x1x1xf32>
      tpu.vector_store %arg6[%c0_44, %c0_45, %c0_46], %67 {strides = array<i32>} : memref<1x1x1xf32, #tpu.memory_space<vmem>>, vector<1x1x1xf32>,
      %cst_47 = arith.constant 0xFF800000 : f32
      %69 = vector.broadcast %cst_47 : f32 to vector<1x1x32xf32>
      %c0_48 = arith.constant 0 : index
      %c0_49 = arith.constant 0 : index
      %c0_50 = arith.constant 0 : index
      %70 = vector.load %arg7[%c0_48, %c0_49, %c0_50] : memref<1x1x32xf32, #tpu.memory_space<vmem>>, vector<1x1x32xf32>
      tpu.vector_store %arg7[%c0_48, %c0_49, %c0_50], %69 {strides = array<i32>} : memref<1x1x32xf32, #tpu.memory_space<vmem>>, vector<1x1x32xf32>,
      %cst_51 = arith.constant 0.000000e+00 : f32
      %71 = vector.broadcast %cst_51 : f32 to vector<1x1x32xf32>
      %c0_52 = arith.constant 0 : index
      %c0_53 = arith.constant 0 : index
      %c0_54 = arith.constant 0 : index
      %72 = vector.load %arg8[%c0_52, %c0_53, %c0_54] : memref<1x1x32xf32, #tpu.memory_space<vmem>>, vector<1x1x32xf32>
      tpu.vector_store %arg8[%c0_52, %c0_53, %c0_54], %71 {strides = array<i32>} : memref<1x1x32xf32, #tpu.memory_space<vmem>>, vector<1x1x32xf32>,
    } else {
    }
    %c0 = arith.constant 0 : index
    %c0_1 = arith.constant 0 : index
    %3 = vector.load %arg2[%c0, %c0_1] : memref<8x32xbf16, #tpu.memory_space<vmem>>, vector<8x32xbf16>
    %c0_2 = arith.constant 0 : index
    %c0_3 = arith.constant 0 : index
    %4 = vector.load %arg3[%c0_2, %c0_3] : memref<32x128xbf16, #tpu.memory_space<vmem>>, vector<32x128xbf16>
    %cst = arith.constant dense<0.000000e+00> : vector<8x128xf32>
    %5 = tpu.matmul %3, %4, %cst {dimension_numbers = #tpu.dot_dimension_numbers<[1], [0], [0], [1], [0, 0, 1, 1], [], []>} : vector<8x32xbf16>, vector<32x128xbf16>, vector<8x128xf32> -> vector<8x128xf32>
    %6 = arith.truncf %5 : vector<8x128xf32> to vector<8x128xbf16>
    %c0_4 = arith.constant 0 : index
    %c0_5 = arith.constant 0 : index
    %7 = vector.load %arg4[%c0_4, %c0_5] : memref<32x128xbf16, #tpu.memory_space<vmem>>, vector<32x128xbf16>
    %cst_6 = arith.constant dense<0.000000e+00> : vector<8x32xf32>
    %8 = tpu.matmul %6, %7, %cst_6 {dimension_numbers = #tpu.dot_dimension_numbers<[1], [1], [0], [0], [0, 0, 1, 0], [], []>} : vector<8x128xbf16>, vector<32x128xbf16>, vector<8x32xf32> -> vector<8x32xf32>
    %c2_i32 = arith.constant 2 : i32
    %9 = arith.muli %arg0, %c2_i32 : i32
    %10 = arith.addi %9, %arg1 : i32
    %c8_i32 = arith.constant 8 : i32
    %11 = arith.muli %10, %c8_i32 : i32
    %12 = tpu.assume_multiple %11, 8 : i32
    %13 = arith.index_cast %12 : i32 to index
    %c0_7 = arith.constant 0 : index
    %14 = vector.load %arg4[%13, %c0_7] : memref<32x128xbf16, #tpu.memory_space<vmem>>, vector<8x128xbf16>
    %15 = arith.extf %14 : vector<8x128xbf16> to vector<8x128xf32>
    %16 = arith.mulf %5, %15 : vector<8x128xf32>
    %cst_8 = arith.constant dense<0.000000e+00> : vector<8xf32>
    %17 = vector.multi_reduction <add>, %16, %cst_8 [1] : vector<8x128xf32> to vector<8xf32>
    %18 = vector.shape_cast %17 : vector<8xf32> to vector<8x1xf32>
    %cst_9 = arith.constant dense<0xFF800000> : vector<8xf32>
    %19 = vector.multi_reduction <maximumf>, %8, %cst_9 [1] : vector<8x32xf32> to vector<8xf32>
    %20 = vector.shape_cast %19 : vector<8xf32> to vector<8x1xf32>
    %21 = vector.broadcast %20 : vector<8x1xf32> to vector<8x32xf32>
    %22 = arith.subf %8, %21 : vector<8x32xf32>
    %23 = math.exp %22 : vector<8x32xf32>
    %cst_10 = arith.constant dense<0.000000e+00> : vector<8xf32>
    %24 = vector.multi_reduction <add>, %23, %cst_10 [1] : vector<8x32xf32> to vector<8xf32>
    %25 = vector.shape_cast %24 : vector<8xf32> to vector<8x1xf32>
    %26 = math.log %25 : vector<8x1xf32>
    %27 = arith.addf %20, %26 : vector<8x1xf32>
    %c0_11 = arith.constant 0 : index
    %c0_12 = arith.constant 0 : index
    %c0_13 = arith.constant 0 : index
    %28 = vector.load %arg5[%c0_11, %c0_12, %c0_13] : memref<1x1x1xf32, #tpu.memory_space<vmem>>, vector<1x1x1xf32>
    %cst_14 = arith.constant dense<0.000000e+00> : vector<1xf32>
    %29 = vector.multi_reduction <add>, %27, %cst_14 [0] : vector<8x1xf32> to vector<1xf32>
    %30 = vector.shape_cast %29 : vector<1xf32> to vector<1x1xf32>
    %31 = vector.shape_cast %30 : vector<1x1xf32> to vector<1x1x1xf32>
    %32 = arith.addf %28, %31 : vector<1x1x1xf32>
    %c0_15 = arith.constant 0 : index
    %c0_16 = arith.constant 0 : index
    %c0_17 = arith.constant 0 : index
    %33 = vector.load %arg5[%c0_15, %c0_16, %c0_17] : memref<1x1x1xf32, #tpu.memory_space<vmem>>, vector<1x1x1xf32>
    tpu.vector_store %arg5[%c0_15, %c0_16, %c0_17], %32 {strides = array<i32>} : memref<1x1x1xf32, #tpu.memory_space<vmem>>, vector<1x1x1xf32>,
    %c0_18 = arith.constant 0 : index
    %c0_19 = arith.constant 0 : index
    %c0_20 = arith.constant 0 : index
    %34 = vector.load %arg6[%c0_18, %c0_19, %c0_20] : memref<1x1x1xf32, #tpu.memory_space<vmem>>, vector<1x1x1xf32>
    %cst_21 = arith.constant dense<0.000000e+00> : vector<1xf32>
    %35 = vector.multi_reduction <add>, %18, %cst_21 [0] : vector<8x1xf32> to vector<1xf32>
    %36 = vector.shape_cast %35 : vector<1xf32> to vector<1x1xf32>
    %37 = vector.shape_cast %36 : vector<1x1xf32> to vector<1x1x1xf32>
    %38 = arith.addf %34, %37 : vector<1x1x1xf32>
    %c0_22 = arith.constant 0 : index
    %c0_23 = arith.constant 0 : index
    %c0_24 = arith.constant 0 : index
    %39 = vector.load %arg6[%c0_22, %c0_23, %c0_24] : memref<1x1x1xf32, #tpu.memory_space<vmem>>, vector<1x1x1xf32>
    tpu.vector_store %arg6[%c0_22, %c0_23, %c0_24], %38 {strides = array<i32>} : memref<1x1x1xf32, #tpu.memory_space<vmem>>, vector<1x1x1xf32>,
    %cst_25 = arith.constant dense<0xFF800000> : vector<1xf32>
    %40 = vector.multi_reduction <maximumf>, %20, %cst_25 [0] : vector<8x1xf32> to vector<1xf32>
    %41 = vector.shape_cast %40 : vector<1xf32> to vector<1x1xf32>
    %42 = vector.broadcast %41 : vector<1x1xf32> to vector<8x1xf32>
    %43 = arith.subf %20, %42 : vector<8x1xf32>
    %44 = math.exp %43 : vector<8x1xf32>
    %45 = vector.broadcast %44 : vector<8x1xf32> to vector<8x32xf32>
    %46 = arith.mulf %23, %45 : vector<8x32xf32>
    %cst_26 = arith.constant dense<0.000000e+00> : vector<32xf32>
    %47 = vector.multi_reduction <add>, %46, %cst_26 [0] : vector<8x32xf32> to vector<32xf32>
    %48 = vector.shape_cast %47 : vector<32xf32> to vector<1x32xf32>
    %c0_27 = arith.constant 0 : index
    %c0_28 = arith.constant 0 : index
    %c0_29 = arith.constant 0 : index
    %49 = vector.load %arg7[%c0_27, %c0_28, %c0_29] : memref<1x1x32xf32, #tpu.memory_space<vmem>>, vector<1x1x32xf32>
    %c0_30 = arith.constant 0 : index
    %c0_31 = arith.constant 0 : index
    %c0_32 = arith.constant 0 : index
    %50 = vector.load %arg8[%c0_30, %c0_31, %c0_32] : memref<1x1x32xf32, #tpu.memory_space<vmem>>, vector<1x1x32xf32>
    %51 = vector.shape_cast %41 : vector<1x1xf32> to vector<1x1x1xf32>
    %52 = vector.broadcast %51 : vector<1x1x1xf32> to vector<1x1x32xf32>
    %53 = arith.maximumf %49, %52 : vector<1x1x32xf32>
    %54 = arith.subf %49, %53 : vector<1x1x32xf32>
    %55 = math.exp %54 : vector<1x1x32xf32>
    %56 = arith.mulf %50, %55 : vector<1x1x32xf32>
    %57 = vector.shape_cast %48 : vector<1x32xf32> to vector<1x1x32xf32>
    %58 = vector.broadcast %51 : vector<1x1x1xf32> to vector<1x1x32xf32>
    %59 = arith.subf %58, %53 : vector<1x1x32xf32>
    %60 = math.exp %59 : vector<1x1x32xf32>
    %61 = arith.mulf %57, %60 : vector<1x1x32xf32>
    %62 = arith.addf %56, %61 : vector<1x1x32xf32>
    %c0_33 = arith.constant 0 : index
    %c0_34 = arith.constant 0 : index
    %c0_35 = arith.constant 0 : index
    %63 = vector.load %arg8[%c0_33, %c0_34, %c0_35] : memref<1x1x32xf32, #tpu.memory_space<vmem>>, vector<1x1x32xf32>
    tpu.vector_store %arg8[%c0_33, %c0_34, %c0_35], %62 {strides = array<i32>} : memref<1x1x32xf32, #tpu.memory_space<vmem>>, vector<1x1x32xf32>,
    %c0_36 = arith.constant 0 : index
    %c0_37 = arith.constant 0 : index
    %c0_38 = arith.constant 0 : index
    %64 = vector.load %arg7[%c0_36, %c0_37, %c0_38] : memref<1x1x32xf32, #tpu.memory_space<vmem>>, vector<1x1x32xf32>
    tpu.vector_store %arg7[%c0_36, %c0_37, %c0_38], %53 {strides = array<i32>} : memref<1x1x32xf32, #tpu.memory_space<vmem>>, vector<1x1x32xf32>,
    return
  }
  func.func @transform_0(%arg0: i32, %arg1: i32) -> (i32, i32) {
    %c2_i32 = arith.constant 2 : i32
    %0 = arith.muli %arg0, %c2_i32 : i32
    %1 = arith.addi %0, %arg1 : i32
    %c0_i32 = arith.constant 0 : i32
    %c0_i32_0 = arith.constant 0 : i32
    return %1, %c0_i32 : i32, i32
  }
  func.func @transform_1(%arg0: i32, %arg1: i32) -> (i32, i32) {
    %c0_i32 = arith.constant 0 : i32
    %c0_i32_0 = arith.constant 0 : i32
    %c0_i32_1 = arith.constant 0 : i32
    return %c0_i32, %c0_i32_0 : i32, i32
  }
  func.func @transform_2(%arg0: i32, %arg1: i32) -> (i32, i32) {
    %c0_i32 = arith.constant 0 : i32
    %c0_i32_0 = arith.constant 0 : i32
    %c0_i32_1 = arith.constant 0 : i32
    return %c0_i32, %c0_i32_0 : i32, i32
  }
  func.func @transform_3(%arg0: i32, %arg1: i32) -> (i32, i32, i32) {
    %c0_i32 = arith.constant 0 : i32
    %c0_i32_0 = arith.constant 0 : i32
    %c0_i32_1 = arith.constant 0 : i32
    return %arg0, %c0_i32, %c0_i32_0 : i32, i32, i32
  }
  func.func @transform_4(%arg0: i32, %arg1: i32) -> (i32, i32, i32) {
    %c0_i32 = arith.constant 0 : i32
    %c0_i32_0 = arith.constant 0 : i32
    %c0_i32_1 = arith.constant 0 : i32
    return %arg0, %c0_i32, %c0_i32_0 : i32, i32, i32
  }
  func.func @transform_5(%arg0: i32, %arg1: i32) -> (i32, i32, i32) {
    %c0_i32 = arith.constant 0 : i32
    %c0_i32_0 = arith.constant 0 : i32
    %c0_i32_1 = arith.constant 0 : i32
    return %arg0, %c0_i32, %c0_i32_0 : i32, i32, i32
  }
  func.func @transform_6(%arg0: i32, %arg1: i32) -> (i32, i32, i32) {
    %c0_i32 = arith.constant 0 : i32
    %c0_i32_0 = arith.constant 0 : i32
    %c0_i32_1 = arith.constant 0 : i32
    return %arg0, %c0_i32, %c0_i32_0 : i32, i32, i32
  }
}

</mosaic_0001>

<bundles_post_ra>
// kernel: tpu_custom_call.1
= control target key start
LH: loop header
LB: loop body
LE: loop exit
PB: predicated region body
PF: predicated region fallthrough
CT: control target
= control target key end

     0   :  { %s1611_s0 = inlined_call_operand.hbm [shape: bf16[32,32], index: 0, kind: input, shape index: {}]   ;;  %s1612_s1 = inlined_call_operand.hbm [shape: bf16[32,128], index: 1, kind: input, shape index: {}]   ;;  %s1613_s2 = inlined_call_operand.hbm [shape: bf16[32,128], index: 2, kind: input, shape index: {}]   ;;  %s1614_s3 = inlined_call_operand.vmem [shape: f32[2,1,1], index: 3, kind: output, shape index: {0}]   ;;  %s1615_s4 = inlined_call_operand.vmem [shape: f32[2,1,1], index: 4, kind: output, shape index: {1}]   ;;  %s1616_s5 = inlined_call_operand.hbm [shape: f32[2,1,32], index: 5, kind: output, shape index: {2}]   ;;  %s1617_s6 = inlined_call_operand.hbm [shape: f32[2,1,32], index: 6, kind: output, shape index: {3}]  }
   0x1   :  { %1631 = sst [smem:[#allocation21_spill]] %s1611_s0 }
   0x2   :  { %1632 = sst [smem:[#allocation22_spill]] %s1612_s1 }
   0x3   :  { %1633 = sst [smem:[#allocation23_spill]] %s1613_s2 }
   0x4   :  { %1634 = sst [smem:[#allocation24_spill]] %s1616_s5 }
   0x5   :  { %1635 = sst [smem:[#allocation25_spill]] %s1617_s6 }
   0x6   :  { %12 = vsyncpa [#allocation3], 0 }
   0x7   :  { %14 = vsyncpa [#allocation3 + $0x1], 0 }
   0x8   :  { %15 = vsyncpa [#allocation6], 0 }
   0x9   :  { %16 = vsyncpa [#allocation4], 0 }
   0xa   :  { %18 = vsyncpa [#allocation4 + $0x1], 0 }
   0xb   :  { %19 = vsyncpa [#allocation10], 0 }
   0xc   :  { %21 = vsyncpa [#allocation10 + $0x1], 0  ;;  %s1243_s21 = smov 0   ;;  %s1245_s22 = smov 0  }
   0xd   :  { %s1247_s23 = smov 0   ;;  %s1249_s24 = smov 0  }
   0xe   :  { %s1251_s25 = smov 0   ;;  %s1253_s26 = smov 0  }
   0xf   :  { %s1255_s27 = smov 0   ;;  %s1257_s28 = smov 0  }
  0x10   :  { %s1259_s29 = smov 0   ;;  %s1261_s30 = smov 0  }
  0x11   :  { %s1263_s7 = smov 0  }
  0x12 LB: > { %1636 = sst [smem:[#allocation15_spill]] %s1155_s21  ;;  %s753_s8 = sadd.s32 4294967295, %s1195_s7   ;;  %s1195_s7 = sphi %s1263_s7, %s27_s7   ;;  %s1191_s30 = sphi %s1261_s30, %s1676_s30   ;;  %s1187_s29 = sphi %s1259_s29, %s1675_s29   ;;  %s1183_s28 = sphi %s1257_s28, %s1674_s28   ;;  %s1179_s27 = sphi %s1255_s27, %s1666_s27   ;;  %s1175_s26 = sphi %s1253_s26, %s1673_s26   ;;  %s1171_s25 = sphi %s1251_s25, %s1672_s25   ;;  %s1167_s24 = sphi %s1249_s24, %s1671_s24   ;;  %s1163_s23 = sphi %s1247_s23, %s1670_s23   ;;  %s1159_s22 = sphi %s1245_s22, %s1669_s22   ;;  %s1155_s21 = sphi %s1243_s21, %s1668_s21  }
  0x13   : > { %1637 = sst [smem:[#allocation16_spill]] %s1179_s27  ;;  %s754_s9 = sadd.s32 4294967294, %s1195_s7  }
  0x14   : > { %1638 = sst [smem:[#allocation17_spill]] %s1187_s29  ;;  %p63_p0 = scmp.ne.s32.totalorder %s1171_s25, %s1167_s24 }
  0x15   : > { %p1299_p1 = scmp.eq.s32.totalorder %s753_s8, 0  ;;  %p180_p2 = scmp.ne.s32.totalorder %s1163_s23, %s1159_s22 }
  0x16   : > { %p181_p3 = scmp.eq.s32.totalorder %s753_s8, 3  ;;  %p186_p5 = scmp.ne.s32.totalorder %s1159_s22, %s1155_s21 }
  0x17   : > { %s1639_s10 = scalar_select %p1299_p1, 1, 0 }
  0x18   : > { %p1307_p4 = por %p1299_p1, %p63_p0  ;;  %p1313_p6 = por %p181_p3, %p180_p2 }
  0x19   : > { %p187_p7 = scmp.eq.s32.totalorder %s754_s9, 3  ;;  %p757_p8 = scmp.ge.s32.totalorder %s1195_s7, 1 }
  0x1a   : > { %s1640_s11 = scalar_select %p1307_p4, 1, 0 }
  0x1b   : > { %s1641_s12 = scalar_select %p1313_p6, 1, 0 }
  0x1c   : > { %p220_p9 = scmp.lt.s32.totalorder %s1195_s7, 5  ;;  %p1319_p10 = por %p187_p7, %p186_p5 }
  0x1d   : > { %1642 = sst [smem:[#allocation18_spill]] %s1641_s12  ;;  %s1197_s15 = smov [#allocation5]  }
  0x1e   : > { %s1643_s13 = scalar_select %p1319_p10, 1, 0 }
  0x1f   : > { %p1323_p11 = pnand %p757_p8, %p220_p9  ;;  %s232_s16 = sshll.u32 %s1197_s15, 4  ;;  %s233_s16 = int_to_ptr.vmem [resolvable:$true] %s232_s16 }
  0x20   : > { %1644 = sst [smem:[#allocation19_spill]] %s1643_s13  ;;  %s1198_s18 = smov [#allocation7]  }
  0x21   : > { %s1645_s14 = scalar_select %p1323_p11, 1, 0 }
  0x22   : > { %p817_p12 = pneg %p1323_p11  ;;  %s245_s19 = sshll.u32 %s1198_s18, 4  ;;  %s1335_s19 = int_to_ptr.vmem [resolvable:$true] %s245_s19 }
  0x23   : > { %s1647_s1 = sld [smem:[#allocation22_spill]] }
  0x24   : > { %p1331_p13 = pnand %p817_p12, %p1299_p1 }
  0x26   : > { %p953_p2 = pneg %p1331_p13 }
  0x29   : > { %s951_s8 = scalar_lea.hbm %s1647_s1, 256 }
  0x2a   : > { %p952_p0 = scmp.ne.s32.totalorder %s1647_s1, %s951_s8  ;;  %p958_p7 = scmp.lt.u32.totalorder %s951_s8, %s1647_s1 }
  0x2c   : > { %p954_p3 = pnand %p953_p2, %p952_p0 }
  0x2e   : > { %p955_p5 = pneg %p954_p3 }
  0x30   : > { %p960_p8 = pnand %p958_p7, %p955_p5 }
  0x32   : > { %963 = shalt.err (!%p960_p8)
}
  0x33   : > { %s964_s18 = scalar_lea.vmem %s233_s16, 256  ;;  %p972_p6 = scmp.lt.s32.totalorder %s233_s16, %s233_s16 }
  0x34   : > { %p965_p9 = scmp.ne.s32.totalorder %s233_s16, %s964_s18  ;;  %p973_p1 = scmp.lt.s32.totalorder %s964_s18, %s964_s18 }
  0x36   : > { %p967_p12 = pnand %p965_p9, %p953_p2  ;;  %p974_p4 = por %p973_p1, %p972_p6 }
  0x38   : > { %p968_p10 = pneg %p967_p12 }
  0x3a   : > { %p975_p11 = pnand %p974_p4, %p968_p10 }
  0x3c   : > { %978 = shalt.err (!%p975_p11)
}
  0x3d   : > { %s1199_s20 = smov 64   ;;  %s1200_s24 = smov 4  }
  0x3e   : > { %820 = dma.hbm_to_vmem [thread:$0]  (!%p1331_p13), %s1647_s1, 256, %s233_s16, [#allocation6], %s1199_s20, %s1199_s20, %s1200_s24  }
  0x3f   : > { %s1648_s2 = sld [smem:[#allocation23_spill]] }
  0x45   : > { %s979_s15 = scalar_lea.hbm %s1648_s2, 256 }
  0x46   : > { %p980_p0 = scmp.ne.s32.totalorder %s1648_s2, %s979_s15  ;;  %p986_p6 = scmp.lt.u32.totalorder %s979_s15, %s1648_s2 }
  0x48   : > { %p982_p1 = pnand %p980_p0, %p953_p2 }
  0x4a   : > { %p983_p4 = pneg %p982_p1 }
  0x4c   : > { %p988_p10 = pnand %p986_p6, %p983_p4 }
  0x4e   : > { %991 = shalt.err (!%p988_p10)
}
  0x4f   : > { %s992_s16 = scalar_lea.vmem %s1335_s19, 256  ;;  %p1000_p7 = scmp.lt.s32.totalorder %s1335_s19, %s1335_s19 }
  0x50   : > { %p993_p11 = scmp.ne.s32.totalorder %s1335_s19, %s992_s16  ;;  %p1001_p8 = scmp.lt.s32.totalorder %s992_s16, %s992_s16 }
  0x52   : > { %p995_p3 = pnand %p993_p11, %p953_p2  ;;  %p1002_p9 = por %p1001_p8, %p1000_p7 }
  0x54   : > { %p996_p5 = pneg %p995_p3 }
  0x56   : > { %p1003_p12 = pnand %p1002_p9, %p996_p5 }
  0x58   : > { %1006 = shalt.err (!%p1003_p12)
}
  0x59   : > { %823 = dma.hbm_to_vmem [thread:$0]  (!%p1331_p13), %s1648_s2, 256, %s1335_s19, [#allocation6], %s1199_s20, %s1199_s20, %s1200_s24  }
  0x5a   : > { %s36_s12 = sadd.s32 1, %s1187_s29  ;;  %s39_s17 = sadd.s32 1, %s1191_s30 }
  0x5b   : > { %p37_p2 = scmp.ge.s32.totalorder %s36_s12, 2  ;;  %s755_s21 = sshll.u32 %s1191_s30, 1 }
  0x5c   : > { %s50_s13 = sadd.s32 1, %s1175_s26  ;;  %s44_s8 = sadd.s32 %s1187_s29, %s755_s21 }
  0x5d   : > { %s1678_s12 = smov (%p37_p2, %s36_s12), 0  ;;  %s1680_s17 = smov (!%p37_p2, %s39_s17), %s1191_s30 }
  0x5e   : > { %p57_p0 = scmp.ne.s32.totalorder %s1175_s26, %s1171_s25  ;;  %p41_p1 = scmp.ge.s32.totalorder %s1680_s17, 2 }
  0x5f   : > { %p58_p4 = scmp.eq.s32.totalorder %s1195_s7, 0  ;;  %s170_s9 = sadd.s32 1, %s1163_s23 }
  0x60   : > { %p837_p6 = scmp.lt.s32.totalorder %s1195_s7, 4  ;;  %s1682_s17 = smov (%p41_p1, %s1680_s17), 0 }
  0x61   : > { %1649 = sst [smem:[#allocation20_spill]] %s1682_s17  ;;  %p1399_p13 = por %p58_p4, %p57_p0 }
  0x62   : > { %s259_s20 = sand.u32 1, %s1175_s26   ;;  %s756_s24 = sshll.u32 %s1682_s17, 1 }
  0x63   : > { %s167_s15 = ssub.s32 %s1191_s30, %s1682_s17  ;;  %s46_s18 = sadd.s32 %s756_s24, %s1678_s12 }
  0x64   : > { %p168_p10 = scmp.eq.s32.totalorder %s167_s15, 0  ;;  %s47_s16 = ssub.s32 %s44_s8, %s46_s18 }
  0x65   : > { %p48_p11 = scmp.eq.s32.totalorder %s47_s16, 0  ;;  %s761_s5 = sshll.u32 %s259_s20, 2 }
  0x66   : > { %s1409_s6 = scalar_select %p168_p10, %s1163_s23, %s170_s9  }
  0x67   : > { %s1412_s21 = scalar_select %p48_p11, %s1175_s26, %s50_s13  }
  0x68   : > { %s763_s1 = sshll.u32 %s44_s8, 6  ;;  %s1651_s0 = sld [smem:[#allocation21_spill]] }
  0x69   : > { %s263_s17 = scalar_lea.vmem [#allocation2], %s761_s5  ;;  %p1425_p3 = pnand %p837_p6, %p1399_p13 }
  0x6a   : > { %s272_s24 = sshll.u32 %s263_s17, 4  ;;  %s260_s13 = scalar_lea.sflag [#allocation3], %s259_s20  ;;  %s1419_s24 = int_to_ptr.vmem [resolvable:$true] %s272_s24 }
  0x6b   : > { %p1009_p7 = pneg %p1425_p3 }
  0x6e   : > { %s1417_s27 = scalar_lea.hbm %s1651_s0, %s763_s1  ;;  %s1012_s17 = scalar_lea.hbm %s1651_s0, 256 }
  0x6f   : > { %s1007_s2 = scalar_lea.hbm %s1417_s27, 64  ;;  %p1013_p12 = scmp.lt.u32.totalorder %s1417_s27, %s1651_s0 }
  0x70   : > { %p1008_p5 = scmp.ne.s32.totalorder %s1417_s27, %s1007_s2  ;;  %p1014_p2 = scmp.lt.u32.totalorder %s1012_s17, %s1007_s2 }
  0x71   : > { %p1016_p1 = scmp.lt.u32.totalorder %s1007_s2, %s1417_s27 }
  0x72   : > { %p1010_p8 = pnand %p1009_p7, %p1008_p5  ;;  %p1015_p0 = por %p1014_p2, %p1013_p12 }
  0x74   : > { %p1011_p9 = pneg %p1010_p8  ;;  %p1017_p4 = por %p1016_p1, %p1015_p0 }
  0x76   : > { %p1018_p6 = pnand %p1017_p4, %p1011_p9 }
  0x78   : > { %1021 = shalt.err (!%p1018_p6)
}
  0x79   : > { %s1022_s20 = scalar_lea.vmem %s1419_s24, 64  ;;  %s1201_s15 = smov [#allocation2]  }
  0x7a   : > { %p1023_p13 = scmp.ne.s32.totalorder %s1419_s24, %s1022_s20  ;;  %s1027_s18 = sshll.u32 %s1201_s15, 4  ;;  %s1028_s18 = int_to_ptr.vmem [resolvable:$false] %s1027_s18 }
  0x7b   : > { %s1029_s16 = scalar_lea.vmem %s1028_s18, 128  ;;  %p1030_p5 = scmp.lt.s32.totalorder %s1419_s24, %s1028_s18 }
  0x7c   : > { %p1025_p10 = pnand %p1023_p13, %p1009_p7  ;;  %p1031_p8 = scmp.lt.s32.totalorder %s1029_s16, %s1022_s20 }
  0x7e   : > { %p1026_p11 = pneg %p1025_p10  ;;  %p1032_p12 = por %p1031_p8, %p1030_p5 }
  0x80   : > { %p1033_p2 = pnand %p1032_p12, %p1026_p11 }
  0x82   : > { %1036 = shalt.err (!%p1033_p2)
}
  0x83   : > { %827 = dma.hbm_to_vmem [thread:$0]  (!%p1425_p3), %s1417_s27, 64, %s1419_s24, %s260_s13  }
  0x84   : > { %p1653_p9 = scmp.ne.s32.totalorder %s1645_s14, 0 }
  0x85   : > { %s283_s5 = sand.u32 (!%p1653_p9), 1, %s1171_s25   ;;  %p1654_p7 = scmp.ne.s32.totalorder (!%p1653_p9), %s1640_s11, 0 }
  0x86   : > { %281 = sbr.rel (%p1653_p9) target bundleno = 929 (0x3a1), region = 32  ;;  %s1457_s2 = sshll.u32 (!%p1653_p9), %s283_s5, 2 }
  0x87   : > { %s284_s1 = scalar_lea.sflag (!%p1653_p9), [#allocation3], %s283_s5  ;;  %s287_s29 = scalar_lea.vmem (!%p1653_p9), [#allocation2], %s1457_s2 }
  0x8d   : > { %1138 = dma.done.wait (%p1654_p7), %s284_s1, 64  }
  0x8e   : > { %1140 = vsyncadd (%p1654_p7), %s284_s1, 4294967232  ;;  %p1655_p0 = scmp.ne.s32.totalorder %s1639_s10, 0 }
  0x90   : > { %1142 = dma.done.wait (%p1655_p0), [#allocation6], 512  }
  0x91   : > { %1144 = vsyncadd (%p1655_p0), [#allocation6], 4294966784  ;;  %s1469_s27 = sand.u32 1, %s1159_s22   ;;  %p335_p3 = scmp.lt.s32.totalorder %s1183_s28, 1 }
  0x92   : > { %s1484_s10 = scalar_lea.vmem [#allocation8], %s1469_s27  ;;  %s1487_s19 = scalar_lea.vmem [#allocation9], %s1469_s27 }
  0x93   : > { %s336_s14 = scalar_select %p335_p3, %s1183_s28, 1 }
  0x94   : > { %s1656_s20 = sld [smem:[#allocation16_spill]] }
  0x95   : > { %s1476_s11 = scalar_lea.vmem %s1614_s3, %s336_s14  ;;  %s1481_s8 = scalar_lea.vmem %s1615_s4, %s336_s14 }
  0x9a   : > { %p768_p1 = scmp.ne.s32.totalorder %s1656_s20, 0 }
  0x9b   : > { %vm346_vm0 = vcmask (!%p768_p1), 0   ;;  %vm349_vm1 = vcmask (!%p768_p1), 253952   ;;  %v1202_v0 = vmov (!%p768_p1), 0.0   ;;  %v1203_v1 = vmov (!%p768_p1), -inf  }
  0x9c   : > { %345 = sbr.rel (%p768_p1) target bundleno = 163 (0xa3), region = 48  ;;  %347 = vst.msk [vmem:[%s1476_s11] sm:$0x1] (!%p768_p1), %vm346_vm0, %v1202_v0  ;;  %348 = vst.msk [vmem:[%s1481_s8] sm:$0x1] (!%p768_p1), %vm346_vm0, %v1202_v0 }
  0x9d   : > { %350 = vst.msk [vmem:[%s1484_s10] sm:$0x1] (!%p768_p1), %vm349_vm1, %v1203_v1  ;;  %351 = vst.msk [vmem:[%s1487_s19] sm:$0x1] (!%p768_p1), %vm349_vm1, %v1202_v0 }
  0xa3 PF: > { %v937_v2 = vld [vmem:[#allocation5] sm:$0xff]   ;;  %v1204_v3 = vmov 0.0   ;;  %s1657_s15 = sld [smem:[#allocation16_spill]]  ;;  %v938_v4 = vld [vmem:[#allocation5 + $0x8] sm:$0xff]   ;;  %vm1205_vm2 = vmmov 0   ;;  %v939_v5 = vld [vmem:[#allocation7] sm:$0xff]  }
  0xa4   : > { %787 = vmatprep.subr.bf16.mxu0 %v1204_v3  ;;  %795 = vmatprep.subr.bf16.mxu1 %v1204_v3  ;;  %v352_v6 = vld [vmem:[%s287_s29] sm:$0xf]  ;;  %vm369_vm3 = vcmask 261120   ;;  %s774_s18 = sshll.u32 %s1183_s28, 1  ;;  %vm502_vm4 = vcmask 0   ;;  %vm542_vm5 = vcmask 253952  }
  0xa5   : > { %788 = vmatpush3.bf16.msra.mxu0 %v937_v2  ;;  %791 = vmatprep.mubr.msk.bf16.mxu0 %vm1205_vm2, %v1204_v3  ;;  %v940_v7 = vld [vmem:[#allocation7 + $0x8] sm:$0xff]   ;;  %s1658_s2 = sld [smem:[#allocation18_spill]]  ;;  %s777_s29 = sshll.u32 %s1183_s28, 4 }
  0xa6   : > { %789 = vmatprep.subr.bf16.mxu0 %v1204_v3  ;;  %799 = vmatprep.mubr.msk.bf16.mxu1 %vm1205_vm2, %v1204_v3  ;;  %v504_v22 = vld [vmem:[%s1481_s8] sm:$0x1]  ;;  %s574_s9 = sshll.u32 %s1484_s10, 4  ;;  %s575_s9 = int_to_ptr.vmem [resolvable:$true] %s574_s9 }
  0xa7   : > { %796 = vmatpush3.bf16.xpose.msra.mxu1 %v939_v5  ;;  %v530_v38 = vld [vmem:[%s1484_s10] sm:$0x1] }
  0xa8   : > { %797 = vmatprep.subr.bf16.mxu1 %v1204_v3  ;;  %v531_v58 = vld [vmem:[%s1487_s19] sm:$0x1] }
  0xa9   : > { %790 = vmatpush3.bf16.msra.mxu0 %v938_v4  ;;  %s471_s16 = sadd.s32 %s1657_s15, %s774_s18  ;;  %s552_s15 = scalar_lea.sflag [#allocation4], %s1469_s27 }
  0xaa   : > { %s775_s5 = sshll.u32 %s471_s16, 3  ;;  %s1037_s18 = scalar_lea.vmem %s575_s9, 16 }
  0xab   : > { %s473_s1 = sshra.s32 %s775_s5, 3  ;;  %p1038_p4 = scmp.ne.s32.totalorder %s575_s9, %s1037_s18 }
  0xac   : > { %792 = vmatmul.mubr.msk.bf16.vlgmr.msra.gmra.mrb[0].mxu0 %vm369_vm3, %v352_v6  ;;  %s776_s14 = sshll.u32 %s473_s1, 2  ;;  %p1660_p6 = scmp.ne.s32.totalorder %s1658_s2, 0 }
  0xad   : > { %s476_s24 = scalar_lea.vmem [#allocation7], %s776_s14  ;;  %s1206_s16 = smov [#allocation8]  }
  0xae   : > { %v477_v8 = vld [vmem:[%s476_s24] sm:$0xf]  ;;  %p1039_p13 = pnand %p1038_p4, %p1660_p6  ;;  %s1041_s5 = sshll.u32 %s1206_s16, 4  ;;  %s1042_s5 = int_to_ptr.vmem [resolvable:$false] %s1041_s5 }
  0xaf   : > { %798 = vmatpush3.bf16.xpose.msra.mxu1 %v940_v7  ;;  %v478_v9 = vunpack.c.l.bf16 %v477_v8  ;;  %s1043_s1 = scalar_lea.vmem %s1042_s5, 32  ;;  %p1044_p11 = scmp.lt.s32.totalorder %s575_s9, %s1042_s5 }
  0xb0   : > { %p1040_p10 = pneg %p1039_p13  ;;  %p1045_p5 = scmp.lt.s32.totalorder %s1043_s1, %s1037_s18 }
  0xb2   : > { %p1046_p8 = por %p1045_p5, %p1044_p11 }
  0xb4   : > { %p1047_p12 = pnand %p1046_p8, %p1040_p10 }
 0x17f   : > { %v407_v10 = vpop.f32.mrb[0].mxu0 }
 0x180   : > { %v413_v11 = vpack.c.bf16 %v407_v10, %v407_v10  ;;  %v793_v12 = vpop.f32.mrb[1].mxu0  ;;  %v479_v13 = vmul.f32 %v478_v9, %v407_v10 }
 0x181   : > { %v410_v14 = vpop.f32.mrb[2].mxu0 }
 0x182   : > { %480 = vadd.xlane.f32.xlu1 %v479_v13  ;;  %v794_v15 = vpop.f32.mrb[3].mxu0  ;;  %800 = vmatmul.mubr.bf16.vlgmr.msra.gmra.mrb[0].mxu1 %v413_v11 }
 0x20f   : > { %v481_v16 = vpop.xlane.xlu1 %480 }
 0x210   : > { %v505_v17 = vrot.slane %v481_v16, 4 }
 0x212   : > { %v506_v18 = vadd.f32 %v505_v17, %v481_v16 }
 0x214   : > { %v507_v19 = vrot.slane %v506_v18, 2 }
 0x216   : > { %v508_v20 = vadd.f32 %v507_v19, %v506_v18 }
 0x218   : > { %v509_v21 = vrot.slane %v508_v20, 1 }
 0x21a   : > { %v510_v23 = vadd.f32 %v509_v21, %v508_v20 }
 0x21c   : > { %v511_v24 = vadd.f32 %v510_v23, %v504_v22 }
 0x21e   : > { %512 = vst.msk [vmem:[%s1481_s8] sm:$0x1] %vm502_vm4, %v511_v24  ;;  %s1659_s8 = sld [smem:[#allocation24_spill]] }
 0x224   : > { %s1524_s20 = scalar_lea.hbm %s1659_s8, %s777_s29 }
 0x255   : > { %v464_v25 = vpop.f32.mrb[0].mxu1 }
 0x256   : > { %v801_v26 = vpop.f32.mrb[1].mxu1  ;;  %v482_v27 = vsel %vm369_vm3, %v464_v25, -inf }
 0x257   : > { %483 = vmax.xlane.f32.xlu0 %v482_v27  ;;  %v467_v28 = vpop.f32.mrb[2].mxu1 }
 0x258   : > { %v802_v29 = vpop.f32.mrb[3].mxu1 }
 0x2e4   : > { %v1503_v30 = vpop.xlane.xlu0 %483 }
 0x2e5   : > { %v485_v31 = vsub.f32 %v464_v25, %v1503_v30  ;;  %v513_v32 = vrot.slane %v1503_v30, 4 }
 0x2e7   : > { %v486_v33 = vmul.f32 1.442695, %v485_v31  ;;  %v514_v34 = vmax.f32 %v1503_v30, %v513_v32 }
 0x2e9   : > { %941 = vpow2.f32 %v486_v33  ;;  %v515_v35 = vrot.slane %v514_v34, 2 }
 0x2eb   : > { %v516_v36 = vmax.f32 %v514_v34, %v515_v35 }
 0x2ed   : > { %v517_v37 = vrot.slane %v516_v36, 1 }
 0x2ef   : > { %v518_v39 = vmax.f32 %v516_v36, %v517_v37 }
 0x2f1   : > { %v519_v40 = vsub.f32 %v1503_v30, %v518_v39  ;;  %v532_v41 = vmax.f32 %v530_v38, %v518_v39 }
 0x2f3   : > { %v942_v42 = vpop.eup %941  ;;  %v520_v43 = vmul.f32 1.442695, %v519_v40  ;;  %544 = vst.msk [vmem:[%s1484_s10] sm:$0x1] %vm542_vm5, %v532_v41  ;;  %v533_v45 = vsub.f32 %v530_v38, %v532_v41  ;;  %v537_v46 = vsub.f32 %v518_v39, %v532_v41 }
 0x2f4   : > { %v488_v44 = vsel %vm369_vm3, %v942_v42, 0.0 }
 0x2f5   : > { %943 = vpow2.f32 %v520_v43  ;;  %489 = vadd.xlane.f32.xlu0 %v488_v44  ;;  %v534_v47 = vmul.f32 1.442695, %v533_v45  ;;  %v538_v49 = vmul.f32 1.442695, %v537_v46 }
 0x2f7   : > { %945 = vpow2.f32 %v534_v47 }
 0x2f8   : > { %947 = vpow2.f32 %v538_v49 }
 0x2ff   : > { %v944_v48 = vpop.eup %943 }
 0x300   : > { %v522_v50 = vmul.f32 %v944_v48, %v942_v42 }
 0x301   : > { %v946_v57 = vpop.eup %945 }
 0x302   : > { %v523_v51 = vsel %vm369_vm3, %v522_v50, 0.0  ;;  %v948_v60 = vpop.eup %947  ;;  %v536_v61 = vmul.f32 %v946_v57, %v531_v58 }
 0x303   : > { %v524_v52 = vrot.slane %v523_v51, 4 }
 0x305   : > { %v525_v53 = vadd.f32 %v524_v52, %v523_v51 }
 0x307   : > { %v526_v54 = vrot.slane %v525_v53, 2 }
 0x309   : > { %v527_v55 = vadd.f32 %v526_v54, %v525_v53 }
 0x30b   : > { %v528_v56 = vrot.slane %v527_v55, 1 }
 0x30d   : > { %v529_v59 = vadd.f32 %v528_v56, %v527_v55 }
 0x30f   : > { %v540_v62 = vmul.f32 %v948_v60, %v529_v59 }
 0x311   : > { %v541_v63 = vadd.f32 %v540_v62, %v536_v61 }
 0x313   : > { %543 = vst.msk [vmem:[%s1487_s19] sm:$0x1] %vm542_vm5, %v541_v63 }
 0x314   : > { %1050 = shalt.err (!%p1047_p12)
}
 0x315   : > { %s1051_s10 = scalar_lea.hbm %s1524_s20, 16  ;;  %s1055_s13 = scalar_lea.hbm %s1659_s8, 32 }
 0x316   : > { %p1052_p2 = scmp.ne.s32.totalorder %s1524_s20, %s1051_s10  ;;  %p1056_p0 = scmp.lt.u32.totalorder %s1524_s20, %s1659_s8 }
 0x317   : > { %p1057_p3 = scmp.lt.u32.totalorder %s1055_s13, %s1051_s10  ;;  %p1059_p4 = scmp.lt.u32.totalorder %s1051_s10, %s1524_s20 }
 0x318   : > { %p1053_p9 = pnand %p1052_p2, %p1660_p6 }
 0x319   : > { %p1058_p1 = por %p1057_p3, %p1056_p0 }
 0x31a   : > { %p1054_p7 = pneg %p1053_p9 }
 0x31b   : > { %p1060_p13 = por %p1059_p4, %p1058_p1 }
 0x31d   : > { %p1061_p10 = pnand %p1060_p13, %p1054_p7 }
 0x31f   : > { %1064 = shalt.err (!%p1061_p10)
}
 0x320   : > { %813 = dma.vmem_to_hbm [thread:$0]  (%p1660_p6), %s575_s9, 16, %s1524_s20, %s552_s15  }
 0x321   : > { %s1661_s1 = sld [smem:[#allocation25_spill]]  ;;  %s587_s24 = sshll.u32 %s1487_s19, 4  ;;  %s588_s24 = int_to_ptr.vmem [resolvable:$true] %s587_s24 }
 0x322   : > { %s556_s10 = scalar_lea.sflag [#allocation10], %s1469_s27  ;;  %s1065_s13 = scalar_lea.vmem %s588_s24, 16 }
 0x323   : > { %p1066_p11 = scmp.ne.s32.totalorder %s588_s24, %s1065_s13  ;;  %s1207_s17 = smov [#allocation9]  }
 0x324   : > { %s1069_s16 = sshll.u32 %s1207_s17, 4  ;;  %s1070_s16 = int_to_ptr.vmem [resolvable:$false] %s1069_s16 }
 0x325   : > { %p1067_p5 = pnand %p1066_p11, %p1660_p6  ;;  %s1071_s0 = scalar_lea.vmem %s1070_s16, 32 }
 0x326   : > { %p1072_p12 = scmp.lt.s32.totalorder %s588_s24, %s1070_s16  ;;  %p1073_p2 = scmp.lt.s32.totalorder %s1071_s0, %s1065_s13 }
 0x327   : > { %s1549_s14 = scalar_lea.hbm %s1661_s1, %s777_s29  ;;  %p1068_p8 = pneg %p1067_p5 }
 0x328   : > { %p1074_p9 = por %p1073_p2, %p1072_p12 }
 0x32a   : > { %p1075_p7 = pnand %p1074_p9, %p1068_p8 }
 0x32c   : > { %1078 = shalt.err (!%p1075_p7)
}
 0x32d   : > { %s1079_s28 = scalar_lea.hbm %s1549_s14, 16  ;;  %s1083_s29 = scalar_lea.hbm %s1661_s1, 32 }
 0x32e   : > { %p1080_p0 = scmp.ne.s32.totalorder %s1549_s14, %s1079_s28  ;;  %p1084_p4 = scmp.lt.u32.totalorder %s1549_s14, %s1661_s1 }
 0x32f   : > { %p1085_p13 = scmp.lt.u32.totalorder %s1083_s29, %s1079_s28  ;;  %p1087_p11 = scmp.lt.u32.totalorder %s1079_s28, %s1549_s14 }
 0x330   : > { %p1081_p3 = pnand %p1080_p0, %p1660_p6 }
 0x331   : > { %p1086_p10 = por %p1085_p13, %p1084_p4 }
 0x332   : > { %p1082_p1 = pneg %p1081_p3 }
 0x333   : > { %p1088_p5 = por %p1087_p11, %p1086_p10 }
 0x335   : > { %p1089_p8 = pnand %p1088_p5, %p1082_p1 }
 0x337   : > { %1092 = shalt.err (!%p1089_p8)
}
 0x338   : > { %814 = dma.vmem_to_hbm [thread:$0]  (%p1660_p6), %s588_s24, 16, %s1549_s14, %s556_s10   ;;  %v494_v9 = vld [vmem:[%s1476_s11] sm:$0x1] }
 0x382   : > { %v490_v0 = vpop.xlane.xlu0 %489 }
 0x383   : > { %949 = vlog2.f32 %v490_v0 }
 0x38d   : > { %v950_v1 = vpop.eup %949 }
 0x38e   : > { %v492_v2 = vmul.f32 0.6931472, %v950_v1 }
 0x390   : > { %v493_v3 = vadd.f32 %v492_v2, %v1503_v30 }
 0x392   : > { %v495_v4 = vrot.slane %v493_v3, 4 }
 0x394   : > { %v496_v5 = vadd.f32 %v495_v4, %v493_v3 }
 0x396   : > { %v497_v6 = vrot.slane %v496_v5, 2 }
 0x398   : > { %v498_v7 = vadd.f32 %v497_v6, %v496_v5 }
 0x39a   : > { %v499_v8 = vrot.slane %v498_v7, 1 }
 0x39c   : > { %v500_v10 = vadd.f32 %v499_v8, %v498_v7 }
 0x39e   : > { %v501_v11 = vadd.f32 %v500_v10, %v494_v9 }
 0x3a0   : > { %503 = vst.msk [vmem:[%s1476_s11] sm:$0x1] %vm502_vm4, %v501_v11 }
 0x3a1 PF: > { %s1662_s0 = sld [smem:[#allocation15_spill]]  ;;  %s1663_s2 = sld [smem:[#allocation19_spill]] }
 0x3a2   : > { %p840_p6 = scmp.ge.s32.totalorder %s1195_s7, 2 }
 0x3a7   : > { %s611_s15 = sand.u32 1, %s1662_s0   ;;  %p1664_p12 = scmp.ne.s32.totalorder %s1663_s2, 0 }
 0x3a8   : > { %s612_s18 = scalar_lea.sflag [#allocation4], %s611_s15 }
 0x3a9   : > { %p829_p2 = pnand %p840_p6, %p1664_p12 }
 0x3ab   : > { %1146 = dma.done.wait (!%p829_p2), %s612_s18, 16  }
 0x3ac   : > { %1148 = vsyncadd (!%p829_p2), %s612_s18, 4294967280  ;;  %s620_s5 = scalar_lea.sflag [#allocation10], %s611_s15 }
 0x3ad   : > { %1150 = dma.done.wait (!%p829_p2), %s620_s5, 16  }
 0x3ae   : > { %1152 = vsyncadd (!%p829_p2), %s620_s5, 4294967280  ;;  %s27_s7 = sadd.s32 1, %s1195_s7   ;;  %s1665_s11 = smov %s1412_s21 }
 0x3af   : > { %p24_p9 = scmp.ge.s32.totalorder %s27_s7, 6   ;;  %s1666_s27 = sld [smem:[#allocation17_spill]] }
 0x3b0   : > { %s1667_s14 = sld [smem:[#allocation20_spill]]  ;;  %s1668_s21 = smov %s1159_s22 }
 0x3b1   : > { %s1669_s22 = smov %s1163_s23  ;;  %s1670_s23 = smov %s1409_s6 }
 0x3b2   : > { %s1671_s24 = smov %s1171_s25  ;;  %s1672_s25 = smov %s1175_s26 }
 0x3b3   : > { %s1673_s26 = smov %s1665_s11  ;;  %s1674_s28 = smov %s1191_s30 }
 0x3b4   : > { %s1675_s29 = smov %s1678_s12  ;;  %26 = sbr.rel (!%p24_p9) target bundleno = 18 (0x12), region = 131 }
 0x3b6   : > { %s1676_s30 = smov %s1667_s14 }
 0x3bb   :  { %624 = vsyncpa [#allocation3], 1 }
 0x3bc   :  { %626 = vsyncpa [#allocation3 + $0x1], 1 }
 0x3bd   :  { %627 = vsyncpa [#allocation6], 1 }
 0x3be   :  { %628 = vsyncpa [#allocation4], 1 }
 0x3bf   :  { %630 = vsyncpa [#allocation4 + $0x1], 1 }
 0x3c0   :  { %631 = vsyncpa [#allocation10], 1 }
 0x3c1   :  { %633 = vsyncpa [#allocation10 + $0x1], 1 }

</bundles_post_ra>
